<compile_context>
chip_gen: v7x
topology: tpu7x:2x2x1
jax: 0.10.0
libtpu: 0.0.40
codegen_flags: <defaults>
</compile_context>

<pallas_src>
import jax
import jax.numpy as jnp
from jax.experimental import pallas as pl
from jax.experimental.pallas import tpu as pltpu

_MIB = 1024 * 1024


def _vmem_limit_bytes(footprint_bytes):
    # Scoped-VMEM limit ~2x the live tile footprint, capped safely below the
    # physical VMEM of the current generation (64 MiB on v7x, 128 MiB v5e/v6e).
    try:
        cap = int(pltpu.get_tpu_info().vmem_capacity_bytes)
    except Exception:       # conservative fallback = v7x capacity
        cap = 64 * _MIB
    ceiling = (cap * 3) // 4
    return int(min(ceiling, max(32 * _MIB, 2 * int(footprint_bytes))))


def _lanes(x, n):
    """Widen/narrow a lane-replicated (rows, 128) array to (rows, n)."""
    w = x.shape[-1]
    if n == w:
        return x
    if n < w:
        return x[:, :n]
    if n % w == 0:
        return jnp.tile(x, (1, n // w))
    return jnp.broadcast_to(x[:, :1], (x.shape[0], n))


def _pick_row_block(t, cap):
    # Full extent for short sequences, otherwise a fixed tile (cdiv grid +
    # masked tail handle the remainder).
    return t if t <= cap else cap


# ---------------------------------------------------------------------------
# Kernel 1: per-(slot, head) QKV projection -> head-major (B, 3H, T, hs)
# ---------------------------------------------------------------------------
def _qkv_heads_kernel(x_ref, w_ref, b_ref, o_ref):
    acc = jnp.dot(x_ref[0], w_ref[0], preferred_element_type=jnp.float32)
    o_ref[0, 0] = (acc + b_ref[0]).astype(o_ref.dtype)


def _qkv_heads_proj(x, w_qkvh, b_qkvh, *, out_dtype, block_t=512):
    B, T, C = x.shape
    S, _, hs = w_qkvh.shape            # S = 3 * n_heads
    bt = _pick_row_block(T, block_t)
    nt = pl.cdiv(T, bt)

    xi = jnp.dtype(x.dtype).itemsize
    wi = jnp.dtype(w_qkvh.dtype).itemsize
    oi = jnp.dtype(out_dtype).itemsize
    footprint = 2 * (bt * C * xi + C * hs * wi + hs * 4 + bt * hs * oi)
    cost = pl.CostEstimate(
        flops=int(2 * B * T * C * S * hs), transcendentals=0,
        bytes_accessed=int(B * T * C * xi + S * C * hs * wi + B * S * T * hs * oi))

    return pl.pallas_call(
        _qkv_heads_kernel,
        out_shape=jax.ShapeDtypeStruct((B, S, T, hs), out_dtype),
        grid_spec=pltpu.PrefetchScalarGridSpec(
            num_scalar_prefetch=0,
            grid=(B, nt, S),            # S innermost: x tile re-used, no re-DMA
            in_specs=[
                pl.BlockSpec((1, bt, C), lambda b, i, j: (b, i, 0)),
                pl.BlockSpec((1, C, hs), lambda b, i, j: (j, 0, 0)),
                pl.BlockSpec((1, 1, hs), lambda b, i, j: (j, 0, 0)),
            ],
            out_specs=pl.BlockSpec((1, 1, bt, hs), lambda b, i, j: (b, j, i, 0)),
        ),
        compiler_params=pltpu.CompilerParams(
            dimension_semantics=("parallel", "parallel", "arbitrary"),
            vmem_limit_bytes=_vmem_limit_bytes(footprint)),
        cost_estimate=cost,
    )(x, w_qkvh, b_qkvh)


# ---------------------------------------------------------------------------
# Kernel 2: flash attention, triangular (no-dead-step) grid, causal
# ---------------------------------------------------------------------------
def _flash_attn_kernel(qi_ref, ki_ref, q_ref, k_ref, v_ref, o_ref,
                       m_sc, l_sc, acc_sc):
    p_idx = pl.program_id(2)
    qi = qi_ref[p_idx]
    ki = ki_ref[p_idx]

    @pl.when(ki == 0)
    def _init():
        m_sc[...] = jnp.full(m_sc.shape, -jnp.inf, jnp.float32)
        l_sc[...] = jnp.zeros(l_sc.shape, jnp.float32)
        acc_sc[...] = jnp.zeros(acc_sc.shape, jnp.float32)

    q = q_ref[0, 0]                    # (block_q, hs), pre-scaled by 1/sqrt(hs)
    k = k_ref[0, 0]                    # (block_kv, hs)
    v = v_ref[0, 0]                    # (block_kv, hs)
    hs = acc_sc.shape[-1]

    # q @ k^T without an explicit transpose (contract the head dims directly).
    s = jax.lax.dot_general(q, k, (((1,), (1,)), ((), ())),
                            preferred_element_type=jnp.float32)

    def accumulate(scores):
        m_prev = m_sc[...]                                         # (bq, 128)
        l_prev = l_sc[...]                                         # (bq, 128)
        m_next = jnp.maximum(m_prev, jnp.max(scores, axis=-1, keepdims=True))
        alpha = jnp.exp(m_prev - m_next)
        p = jnp.exp(scores - _lanes(m_next, scores.shape[-1]))
        l_sc[...] = alpha * l_prev + jnp.sum(p, axis=-1, keepdims=True)
        acc_sc[...] = _lanes(alpha, hs) * acc_sc[...] + jnp.dot(
            p.astype(v.dtype), v, preferred_element_type=jnp.float32)
        m_sc[...] = m_next

    # Interior tiles (strictly below the diagonal) are fully visible: no mask work.
    @pl.when(ki < qi)
    def _interior():
        accumulate(s)

    # Diagonal tile: apply the causal mask (also covers KV tail padding since
    # block_q == block_kv => the tile-local mask r >= c equals the absolute one),
    # then finalize — the triangular ordering makes it the last KV step.
    @pl.when(ki == qi)
    def _diag_and_finalize():
        rows = jax.lax.broadcasted_iota(jnp.int32, s.shape, 0)
        cols = jax.lax.broadcasted_iota(jnp.int32, s.shape, 1)
        accumulate(jnp.where(rows >= cols, s, jnp.float32(-1e9)))
        # Exact divide: runs once per q tile, so the approx reciprocal isn't worth it.
        o_ref[0, 0] = (acc_sc[...] / _lanes(l_sc[...], hs)).astype(o_ref.dtype)


def _flash_attention(qkv, *, n_heads, block=256):
    B, S, T, hs = qkv.shape
    assert S == 3 * n_heads
    # Keep block_q == block_kv: the diagonal/finalize logic relies on it.
    block_q = block_kv = min(block, T)
    nq = pl.cdiv(T, block_q)

    # Enumerate only lower-triangular (q_tile, kv_tile) pairs, ki ascending per qi:
    # ki == 0 initializes the stats, ki == qi masks + finalizes.
    qi_list, ki_list = [], []
    for q_i in range(nq):
        for k_i in range(q_i + 1):
            qi_list.append(q_i)
            ki_list.append(k_i)
    qi_map = jnp.asarray(qi_list, dtype=jnp.int32)
    ki_map = jnp.asarray(ki_list, dtype=jnp.int32)
    n_pairs = len(qi_list)

    itemsize = jnp.dtype(qkv.dtype).itemsize
    blk_bytes = (2 * block_q * hs + 2 * block_kv * hs) * itemsize
    scratch_bytes = (2 * 128 * block_q + block_q * hs) * 4
    footprint = 2 * blk_bytes + scratch_bytes

    cost = pl.CostEstimate(
        flops=int(2 * B * n_heads * T * (T + block_kv) * hs),
        transcendentals=int(B * n_heads * T * (T + block_kv) // 2),
        bytes_accessed=int(B * n_heads * T * hs * itemsize * (3 + nq)))

    q_spec = pl.BlockSpec((1, 1, block_q, hs),
                          lambda b, h, p, qi, ki: (b, h, qi[p], 0))
    k_spec = pl.BlockSpec((1, 1, block_kv, hs),
                          lambda b, h, p, qi, ki: (b, n_heads + h, ki[p], 0))
    v_spec = pl.BlockSpec((1, 1, block_kv, hs),
                          lambda b, h, p, qi, ki: (b, 2 * n_heads + h, ki[p], 0))
    o_spec = pl.BlockSpec((1, 1, block_q, hs),
                          lambda b, h, p, qi, ki: (b, h, qi[p], 0))

    return pl.pallas_call(
        _flash_attn_kernel,
        out_shape=jax.ShapeDtypeStruct((B, n_heads, T, hs), qkv.dtype),
        grid_spec=pltpu.PrefetchScalarGridSpec(
            num_scalar_prefetch=2,
            grid=(B, n_heads, n_pairs),
            in_specs=[q_spec, k_spec, v_spec],
            out_specs=o_spec,
            scratch_shapes=[
                pltpu.VMEM((block_q, 128), jnp.float32),   # m (lane-replicated)
                pltpu.VMEM((block_q, 128), jnp.float32),   # l (lane-replicated)
                pltpu.VMEM((block_q, hs), jnp.float32),    # acc (numerator)
            ],
        ),
        compiler_params=pltpu.CompilerParams(
            dimension_semantics=("parallel", "parallel", "arbitrary"),
            vmem_limit_bytes=_vmem_limit_bytes(footprint)),
        cost_estimate=cost,
    )(qi_map, ki_map, qkv, qkv, qkv)


# ---------------------------------------------------------------------------
# Kernel 3: head-merge + output projection (head axis = reduction grid axis)
# ---------------------------------------------------------------------------
def _merge_proj_kernel(a_ref, w_ref, b_ref, o_ref, acc_ref):
    h = pl.program_id(2)

    @pl.when(h == 0)
    def _init():
        acc_ref[...] = jnp.zeros_like(acc_ref)

    acc_ref[...] += jnp.dot(a_ref[0, 0], w_ref[0],
                            preferred_element_type=jnp.float32)

    @pl.when(h == pl.num_programs(2) - 1)
    def _finalize():
        o_ref[0] = (acc_ref[...] + b_ref[...]).astype(o_ref.dtype)


def _head_merge_proj(attn, wp_h, bp, *, out_dtype, block_t=512):
    B, H, T, hs = attn.shape
    _, _, C = wp_h.shape
    bt = _pick_row_block(T, block_t)
    nt = pl.cdiv(T, bt)

    ai = jnp.dtype(attn.dtype).itemsize
    wi = jnp.dtype(wp_h.dtype).itemsize
    oi = jnp.dtype(out_dtype).itemsize
    footprint = 2 * (bt * hs * ai + hs * C * wi + C * 4 + bt * C * oi) + bt * C * 4
    cost = pl.CostEstimate(
        flops=int(2 * B * T * C * C), transcendentals=0,
        bytes_accessed=int(B * T * C * ai + H * hs * C * wi + B * T * C * oi))

    return pl.pallas_call(
        _merge_proj_kernel,
        out_shape=jax.ShapeDtypeStruct((B, T, C), out_dtype),
        grid_spec=pltpu.PrefetchScalarGridSpec(
            num_scalar_prefetch=0,
            grid=(B, nt, H),
            in_specs=[
                pl.BlockSpec((1, 1, bt, hs), lambda b, i, h: (b, h, i, 0)),
                pl.BlockSpec((1, hs, C), lambda b, i, h: (h, 0, 0)),
                pl.BlockSpec((1, C), lambda b, i, h: (0, 0)),
            ],
            out_specs=pl.BlockSpec((1, bt, C), lambda b, i, h: (b, i, 0)),
            scratch_shapes=[pltpu.VMEM((bt, C), jnp.float32)],
        ),
        compiler_params=pltpu.CompilerParams(
            dimension_semantics=("parallel", "parallel", "arbitrary"),
            vmem_limit_bytes=_vmem_limit_bytes(footprint)),
        cost_estimate=cost,
    )(attn, wp_h, bp)


# ---------------------------------------------------------------------------
# One-time weight preparation (hoisted out of the per-call forward)
# ---------------------------------------------------------------------------
def prepare_attention_params(params, *, n_heads, compute_dtype=jnp.bfloat16):
    C = params["wq"].shape[0]
    assert C % n_heads == 0
    hs = C // n_heads
    scale = 1.0 / (hs ** 0.5)

    def w_heads(w):          # (C, C) -> (H, C, hs)
        return jnp.transpose(w.reshape(C, n_heads, hs), (1, 0, 2))

    def b_heads(b):          # (1, C) -> (H, 1, hs)
        return jnp.transpose(b.reshape(1, n_heads, hs), (1, 0, 2))

    # Softmax scale folded into the q projection (exact: scale*(xW+b) = x(sW)+sb).
    w_qkvh = jnp.concatenate(
        [w_heads(params["wq"] * scale), w_heads(params["wk"]), w_heads(params["wv"])],
        axis=0).astype(compute_dtype)                                  # (3H, C, hs)
    b_qkvh = jnp.concatenate(
        [b_heads(params["bq"] * scale), b_heads(params["bk"]), b_heads(params["bv"])],
        axis=0).astype(jnp.float32)                                    # (3H, 1, hs)
    wp_h = params["wp"].reshape(n_heads, hs, C).astype(compute_dtype)  # (H, hs, C)
    bp = params["bp"].astype(jnp.float32)                              # (1, C)
    return {"w_qkvh": w_qkvh, "b_qkvh": b_qkvh, "wp_h": wp_h, "bp": bp,
            "n_heads": n_heads, "compute_dtype": compute_dtype}


# ---------------------------------------------------------------------------
# Full forward pass (matches the PyTorch module in eval mode)
# ---------------------------------------------------------------------------
def attention_forward(x, prepped, *, attn_block=256, proj_block_t=512):
    """x: (B, T, C) -> (B, T, C). attn_dropout / resid_dropout are identity (eval)."""
    n_heads = prepped["n_heads"]
    cdt = prepped["compute_dtype"]

    xq = x.astype(cdt)
    qkv = _qkv_heads_proj(xq, prepped["w_qkvh"], prepped["b_qkvh"],
                          out_dtype=cdt, block_t=proj_block_t)          # (B, 3H, T, hs)
    attn = _flash_attention(qkv, n_heads=n_heads, block=attn_block)     # (B, H, T, hs)
    out = _head_merge_proj(attn, prepped["wp_h"], prepped["bp"],
                           out_dtype=x.dtype, block_t=proj_block_t)     # (B, T, C)
    return out


# ---------------------------------------------------------------------------
# Pure-JAX reference (f32) mirroring the PyTorch forward in eval mode
# ---------------------------------------------------------------------------
def attention_reference(x, params, *, n_heads):
    B, T, C = x.shape
    hs = C // n_heads
    scale = 1.0 / (hs ** 0.5)

    def lin(x, w, b):
        return jnp.einsum("btc,cd->btd", x, w) + b[0]

    q = lin(x, params["wq"], params["bq"]).reshape(B, T, n_heads, hs).transpose(0, 2, 1, 3)
    k = lin(x, params["wk"], params["bk"]).reshape(B, T, n_heads, hs).transpose(0, 2, 1, 3)
    v = lin(x, params["wv"], params["bv"]).reshape(B, T, n_heads, hs).transpose(0, 2, 1, 3)

    scores = jnp.einsum("bhqd,bhkd->bhqk", q, k) * scale
    mask = jnp.tril(jnp.ones((T, T)))
    scores = jnp.where(mask == 0, -1e9, scores)
    w = jax.nn.softmax(scores, axis=-1)
    out = jnp.einsum("bhqk,bhkd->bhqd", w, v)
    out = out.transpose(0, 2, 1, 3).reshape(B, T, C)
    return lin(out, params["wp"], params["bp"])


if __name__ == "__main__":
    # Small config consistent with the module: batch=2, seq=8, embed=32, heads=4.
    B, T, C, H = 2, 8, 32, 4

    key = jax.random.PRNGKey(0)
    ks = jax.random.split(key, 9)
    wscale = 0.05
    params = {
        "wq": jax.random.normal(ks[0], (C, C), jnp.float32) * wscale,
        "bq": jax.random.normal(ks[1], (1, C), jnp.float32) * wscale,
        "wk": jax.random.normal(ks[2], (C, C), jnp.float32) * wscale,
        "bk": jax.random.normal(ks[3], (1, C), jnp.float32) * wscale,
        "wv": jax.random.normal(ks[4], (C, C), jnp.float32) * wscale,
        "bv": jax.random.normal(ks[5], (1, C), jnp.float32) * wscale,
        "wp": jax.random.normal(ks[6], (C, C), jnp.float32) * wscale,
        "bp": jax.random.normal(ks[7], (1, C), jnp.float32) * wscale,
    }
    x = jax.random.normal(ks[8], (B, T, C), jnp.float32)

    prepped = prepare_attention_params(params, n_heads=H)   # one-time weight prep
    out = attention_forward(x, prepped)
    jax.block_until_ready(out)

    ref = attention_reference(x, params, n_heads=H)
    assert out.shape == (B, T, C)
    # bf16 matmul inputs => relaxed tolerance vs the f32 reference.
    assert jnp.allclose(out, ref, atol=2e-2, rtol=2e-2), "mismatch vs reference"

    print("KERNEL_OK")
</pallas_src>

<mosaic_0001>
module attributes {stable_mosaic.version = 11 : i64} {
  func.func @_qkv_heads_kernel(%arg0: i32, %arg1: i32, %arg2: i32, %arg3: memref<1x8x32xbf16, #tpu.memory_space<vmem>>, %arg4: memref<1x32x8xbf16, #tpu.memory_space<vmem>>, %arg5: memref<1x1x8xf32, #tpu.memory_space<vmem>>, %arg6: memref<1x1x8x8xbf16, #tpu.memory_space<vmem>>) attributes {dimension_semantics = [#tpu.dimension_semantics<parallel>, #tpu.dimension_semantics<parallel>, #tpu.dimension_semantics<arbitrary>], iteration_bounds = array<i64: 2, 1, 12>, scalar_prefetch = 0 : i64, scratch_operands = 0 : i64, tpu.core_type = #tpu.core_type<tc>, window_params = [{transform_indices = @transform_0, window_bounds = array<i64: 1, 8, 32>}, {transform_indices = @transform_1, window_bounds = array<i64: 1, 32, 8>}, {transform_indices = @transform_2, window_bounds = array<i64: 1, 1, 8>}, {transform_indices = @transform_3, window_bounds = array<i64: 1, 1, 8, 8>}]} {
    %c0 = arith.constant 0 : index
    %c0_0 = arith.constant 0 : index
    %c0_1 = arith.constant 0 : index
    %0 = vector.load %arg3[%c0, %c0_0, %c0_1] : memref<1x8x32xbf16, #tpu.memory_space<vmem>>, vector<1x8x32xbf16>
    %1 = vector.shape_cast %0 : vector<1x8x32xbf16> to vector<8x32xbf16>
    %c0_2 = arith.constant 0 : index
    %c0_3 = arith.constant 0 : index
    %c0_4 = arith.constant 0 : index
    %2 = vector.load %arg4[%c0_2, %c0_3, %c0_4] : memref<1x32x8xbf16, #tpu.memory_space<vmem>>, vector<1x32x8xbf16>
    %3 = vector.shape_cast %2 : vector<1x32x8xbf16> to vector<32x8xbf16>
    %cst = arith.constant dense<0.000000e+00> : vector<8x8xf32>
    %4 = tpu.matmul %1, %3, %cst {dimension_numbers = #tpu.dot_dimension_numbers<[1], [0], [0], [1], [0, 0, 1, 1], [], []>} : vector<8x32xbf16>, vector<32x8xbf16>, vector<8x8xf32> -> vector<8x8xf32>
    %c0_5 = arith.constant 0 : index
    %c0_6 = arith.constant 0 : index
    %c0_7 = arith.constant 0 : index
    %5 = vector.load %arg5[%c0_5, %c0_6, %c0_7] : memref<1x1x8xf32, #tpu.memory_space<vmem>>, vector<1x1x8xf32>
    %6 = vector.shape_cast %5 : vector<1x1x8xf32> to vector<1x8xf32>
    %7 = vector.broadcast %6 : vector<1x8xf32> to vector<8x8xf32>
    %8 = arith.addf %4, %7 : vector<8x8xf32>
    %9 = arith.truncf %8 : vector<8x8xf32> to vector<8x8xbf16>
    %c0_8 = arith.constant 0 : index
    %c0_9 = arith.constant 0 : index
    %c0_10 = arith.constant 0 : index
    %c0_11 = arith.constant 0 : index
    %10 = vector.load %arg6[%c0_8, %c0_9, %c0_10, %c0_11] : memref<1x1x8x8xbf16, #tpu.memory_space<vmem>>, vector<1x1x8x8xbf16>
    %11 = vector.shape_cast %10 : vector<1x1x8x8xbf16> to vector<8x8xbf16>
    %12 = vector.shape_cast %9 : vector<8x8xbf16> to vector<1x1x8x8xbf16>
    tpu.vector_store %arg6[%c0_8, %c0_9, %c0_10, %c0_11], %12 {strides = array<i32>} : memref<1x1x8x8xbf16, #tpu.memory_space<vmem>>, vector<1x1x8x8xbf16>,
    return
  }
  func.func @transform_0(%arg0: i32, %arg1: i32, %arg2: i32) -> (i32, i32, i32) {
    %c0_i32 = arith.constant 0 : i32
    %c0_i32_0 = arith.constant 0 : i32
    return %arg0, %arg1, %c0_i32 : i32, i32, i32
  }
  func.func @transform_1(%arg0: i32, %arg1: i32, %arg2: i32) -> (i32, i32, i32) {
    %c0_i32 = arith.constant 0 : i32
    %c0_i32_0 = arith.constant 0 : i32
    %c0_i32_1 = arith.constant 0 : i32
    return %arg2, %c0_i32, %c0_i32_0 : i32, i32, i32
  }
  func.func @transform_2(%arg0: i32, %arg1: i32, %arg2: i32) -> (i32, i32, i32) {
    %c0_i32 = arith.constant 0 : i32
    %c0_i32_0 = arith.constant 0 : i32
    %c0_i32_1 = arith.constant 0 : i32
    return %arg2, %c0_i32, %c0_i32_0 : i32, i32, i32
  }
  func.func @transform_3(%arg0: i32, %arg1: i32, %arg2: i32) -> (i32, i32, i32, i32) {
    %c0_i32 = arith.constant 0 : i32
    %c0_i32_0 = arith.constant 0 : i32
    return %arg0, %arg2, %arg1, %c0_i32 : i32, i32, i32, i32
  }
}

</mosaic_0001>

<bundles_post_ra>
// kernel: tpu_custom_call.1
= control target key start
LH: loop header
LB: loop body
LE: loop exit
PB: predicated region body
PF: predicated region fallthrough
CT: control target
= control target key end

     0   :  { %s571_s12 = smov 0   ;;  %s573_s13 = smov 0   ;;  %s628_s0 = inlined_call_operand.vmem [shape: bf16[2,8,32], index: 0, kind: input, shape index: {}]   ;;  %s629_s1 = inlined_call_operand.vmem [shape: bf16[12,32,8], index: 1, kind: input, shape index: {}]   ;;  %s630_s2 = inlined_call_operand.vmem [shape: f32[12,1,8], index: 2, kind: input, shape index: {}]   ;;  %s631_s3 = inlined_call_operand.vmem [shape: bf16[2,12,8,8], index: 3, kind: output, shape index: {}]  }
   0x1   :  { %s575_s14 = smov 0   ;;  %s577_s15 = smov 0  }
   0x2   :  { %s579_s16 = smov 0  }
   0x3 LB: > { %s25_s17 = sadd.s32 1, %s539_s14  ;;  %s32_s18 = sadd.s32 1, %s543_s15  ;;  %s547_s16 = sphi %s579_s16, %s13_s16   ;;  %s543_s15 = sphi %s577_s15, %s635_s15   ;;  %s539_s14 = sphi %s575_s14, %s634_s14   ;;  %s535_s13 = sphi %s573_s13, %s633_s13   ;;  %s531_s12 = sphi %s571_s12, %s632_s12  }
   0x4   : > { %p26_p0 = scmp.ge.s32.totalorder %s25_s17, 12  ;;  %p441_p1 = scmp.ge.s32.totalorder %s547_s16, 1 }
   0x5   : > { %p182_p2 = scmp.lt.s32.totalorder %s547_s16, 25 }
   0x6   : > { %s637_s17 = smov (%p26_p0, %s25_s17), 0  ;;  %s639_s18 = smov (!%p26_p0, %s32_s18), %s543_s15 }
   0x7   : > { %p183_p3 = pnand %p441_p1, %p182_p2  ;;  %p34_p4 = scmp.ge.s32.totalorder %s639_s18, 2 }
   0x8   : > { %p229_p5 = scmp.lt.s32.totalorder (!%p183_p3), %s531_s12, 11  ;;  %p222_p6 = scmp.lt.s32.totalorder (!%p183_p3), %s535_s13, 1  ;;  %v549_v0 = vmov (!%p183_p3), 0.0   ;;  %vm550_vm0 = vmmov (!%p183_p3), 0   ;;  %vm273_vm1 = vcmask (!%p183_p3), 261120   ;;  %vm318_vm2 = vcmask (!%p183_p3), 60416  }
   0x9   : > { %s641_s18 = smov (%p34_p4, %s639_s18), 0  ;;  %186 = sbr.rel (%p183_p3) target bundleno = 244 (0xf4), region = 32 }
   0xa   : > { %456 = vmatprep.subr.bf16.mxu0 (!%p183_p3), %v549_v0  ;;  %460 = vmatprep.mubr.msk.bf16.mxu0 (!%p183_p3), %vm550_vm0, %v549_v0 }
  0x10   : > { %s643_s12 = smov (!%p229_p5, %s531_s12), 11  ;;  %s645_s13 = smov (!%p222_p6, %s535_s13), 1 }
  0x11   : > { %s452_s19 = sshll.u32 %s643_s12, 4  ;;  %s442_s23 = sshll.u32 %s645_s13, 2 }
  0x12   : > { %s233_s22 = scalar_lea.vmem %s629_s1, %s452_s19  ;;  %s464_s24 = smul.u32 12, %s645_s13 }
  0x13   : > { %v507_v1 = vld [vmem:[%s233_s22] sm:$0xff]   ;;  %v508_v2 = vld [vmem:[%s233_s22 + $0x8] sm:$0xff]   ;;  %s228_s28 = scalar_lea.vmem %s628_s0, %s442_s23  ;;  %s236_s4 = scalar_lea.vmem %s630_s2, %s643_s12 }
  0x14   : > { %457 = vmatpush3.bf16.msra.mxu0 %v507_v1  ;;  %s245_s25 = sadd.s32 %s464_s24, %s643_s12  ;;  %v249_v3 = vld [vmem:[%s228_s28] sm:$0xf] }
  0x15   : > { %458 = vmatprep.subr.bf16.mxu0 %v549_v0  ;;  %v446_v4 = vld [vmem:[%s236_s4] ss:$0 sm:$0xff]  ;;  %s445_s5 = sshll.u32 %s245_s25, 2 }
  0x16   : > { %s247_s8 = scalar_lea.vmem %s631_s3, %s445_s5 }
  0x18   : > { %459 = vmatpush3.bf16.msra.mxu0 %v508_v2 }
  0x1b   : > { %461 = vmatmul.mubr.msk.bf16.vlgmr.msra.gmra.mrb[0].mxu0 %vm273_vm1, %v249_v3 }
  0xee   : > { %v311_v5 = vpop.f32.mrb[0].mxu0 }
  0xef   : > { %v312_v6 = vadd.f32 %v446_v4, %v311_v5  ;;  %v462_v7 = vpop.f32.mrb[1].mxu0 }
  0xf0   : > { %v314_v8 = vpop.f32.mrb[2].mxu0 }
  0xf1   : > { %v317_v9 = vpack.c.bf16 %v312_v6, %v312_v6  ;;  %v463_v10 = vpop.f32.mrb[3].mxu0 }
  0xf3   : > { %319 = vst.msk [vmem:[%s247_s8] sm:$0xf] %vm318_vm2, %v317_v9 }
  0xf4 PF: > { %s13_s16 = sadd.s32 1, %s547_s16   ;;  %s632_s12 = smov %s539_s14 }
  0xf5   : > { %p10_p7 = scmp.ge.s32.totalorder %s13_s16, 26   ;;  %s633_s13 = smov %s543_s15 }
  0xf6   : > { %s634_s14 = smov %s637_s17  ;;  %s635_s15 = smov %s641_s18 }
  0xf7   :  { %12 = sbr.rel (!%p10_p7) target bundleno = 3 (0x3), region = 68 }

</bundles_post_ra>
